<compile_context>
chip_gen: v7x
topology: tpu7x:2x2x1
jax: 0.10.0
libtpu: 0.0.40
codegen_flags: <defaults>
</compile_context>

<pallas_src>
import functools

import jax
import jax.numpy as jnp
from jax.experimental import pallas as pl
from jax.experimental.pallas import tpu as pltpu


def _copy_kernel(x_ref, o_ref):
    # Pure tile copy (HBM -> VMEM -> HBM through the BlockSpec pipeline).
    o_ref[...] = x_ref[...]


def _tpu_params():
    """Return (block_bytes_cap, num_tensorcores) for the current TPU generation."""
    kind = ""
    try:
        kind = jax.devices()[0].device_kind.lower()
    except Exception:
        pass
    if "v5 lite" in kind or "v5e" in kind or "v5litepod" in kind:
        # 16 MiB scoped-VMEM default: 2 (in+out) x 2 (double buffer) x 3 MiB = 12 MiB.
        return 3 * 1024 * 1024, 1
    if "v6" in kind:
        # 32 MiB scoped-VMEM default: 4 x 8 MiB = 32 MiB.
        return 8 * 1024 * 1024, 1
    if "v7" in kind:
        # 64 MiB physical VMEM, keep headroom; 2 TensorCores per chip.
        return 6 * 1024 * 1024, 2
    return 4 * 1024 * 1024, 1


def _choose_lanes(total):
    """Largest lane-dense width (multiple of 128) dividing the element count."""
    for cand in (8192, 4096, 2048, 1024, 512, 256, 128):
        if total % cand == 0:
            return cand
    return None


@functools.lru_cache(maxsize=None)
def _build_copy_fn(shape, dtype_name, donate):
    """Build (and cache) a jitted Pallas copy for a given (shape, dtype)."""
    dtype = jnp.dtype(dtype_name)
    itemsize = dtype.itemsize
    total = 1
    for d in shape:
        total *= d

    block_bytes, num_cores = _tpu_params()

    lanes = _choose_lanes(total)
    if lanes is None:
        # Awkward size: single full-extent block (always legal).
        rows, lanes = 1, total
    else:
        rows = total // lanes

    # Dtype-aware sublane multiple: 8 for f32, 16 for bf16/f16, 32 for int8/fp8.
    sub = max(8, 32 // max(itemsize, 1))

    if rows <= sub:
        tr = rows  # full-extent row block (legal even when unaligned)
        grid = (1,)
    else:
        tr = max(sub, block_bytes // (lanes * itemsize))
        tr = max(sub, (tr // sub) * sub)  # sublane-aligned row tile
        tr = min(tr, rows)
        if num_cores > 1:
            # Multi-TensorCore chips: keep >= 2 pipelined steps per core so the
            # HBM->VMEM load and VMEM->HBM store stay overlapped on each core.
            min_steps = 4 * num_cores
            if rows >= min_steps * sub and pl.cdiv(rows, tr) < min_steps:
                tr = max(sub, ((rows // min_steps) // sub) * sub)
        grid = (pl.cdiv(rows, tr),)

    copy_call = pl.pallas_call(
        _copy_kernel,
        out_shape=jax.ShapeDtypeStruct((rows, lanes), dtype),
        grid=grid,
        in_specs=[pl.BlockSpec((tr, lanes), lambda i: (i, 0))],
        out_specs=pl.BlockSpec((tr, lanes), lambda i: (i, 0)),
        input_output_aliases={0: 0} if donate else {},
        compiler_params=pltpu.CompilerParams(
            dimension_semantics=("parallel",),
        ),
        cost_estimate=pl.CostEstimate(
            flops=0, transcendentals=0, bytes_accessed=2 * total * itemsize
        ),
    )

    def fn(x):
        # Reshapes live inside the jit so they fuse (bitcast) around pallas_call
        # instead of materializing extra HBM buffers eagerly.
        return copy_call(x.reshape(rows, lanes)).reshape(shape)

    if donate:
        return jax.jit(fn, donate_argnums=0)
    return jax.jit(fn)


def identity(x: jax.Array) -> jax.Array:
    """Forward of the Identity head (resnet.fc): returns x unchanged.

    True no-op: zero HBM read/write traffic and zero kernel launches, exactly
    matching torch.nn.Identity semantics.
    """
    return x


def identity_copy(x: jax.Array, *, donate: bool = False) -> jax.Array:
    """Explicitly materialized copy of x via a Pallas tile-copy kernel.

    Only for callers that genuinely need a fresh buffer; the Identity module
    itself never requires this.  Compiled callable is cached per (shape, dtype).
    """
    if x.size == 0:
        return x
    fn = _build_copy_fn(tuple(x.shape), jnp.dtype(x.dtype).name, bool(donate))
    return fn(x)


class FeatureExtractorFace:
    """Pallas-side stand-in: only the Identity head is implemented.

    TODO(synk): ResNet-50 backbone + pickled pretrained weights not translated.
    """

    def __call__(self, x: jax.Array) -> jax.Array:
        return identity(x)


if __name__ == "__main__":
    key = jax.random.PRNGKey(0)
    k1, k2 = jax.random.split(key)

    # Identity head forward: true no-op (matches nn.Identity, zero HBM traffic).
    x = jax.random.normal(k1, (2, 4, 16, 16), dtype=jnp.float32)
    model = FeatureExtractorFace()
    y = model(x)
    jax.block_until_ready(y)
    assert y.shape == x.shape and y.dtype == x.dtype
    assert bool(jnp.array_equal(y, x))

    # Exercise the optional Pallas copy path (compiled once, cached).
    x2 = jax.random.normal(k2, (2, 8, 64, 128), dtype=jnp.float32)
    y2 = identity_copy(x2)
    jax.block_until_ready(y2)
    assert y2.shape == x2.shape and y2.dtype == x2.dtype
    assert bool(jnp.array_equal(y2, x2))

    # Second call hits the lru_cache'd jitted callable: no retrace / recompile.
    y3 = identity_copy(x2)
    jax.block_until_ready(y3)
    assert bool(jnp.array_equal(y3, x2))

    print("KERNEL_OK")
</pallas_src>

<mosaic_0001>
module attributes {stable_mosaic.version = 11 : i64} {
  func.func @_copy_kernel(%arg0: i32, %arg1: memref<16x8192xf32, #tpu.memory_space<vmem>>, %arg2: memref<16x8192xf32, #tpu.memory_space<vmem>>) attributes {dimension_semantics = [#tpu.dimension_semantics<parallel>], iteration_bounds = array<i64: 1>, scalar_prefetch = 0 : i64, scratch_operands = 0 : i64, tpu.core_type = #tpu.core_type<tc>, window_params = [{transform_indices = @transform_0, window_bounds = array<i64: 16, 8192>}, {transform_indices = @transform_1, window_bounds = array<i64: 16, 8192>}]} {
    %c0 = arith.constant 0 : index
    %c0_0 = arith.constant 0 : index
    %0 = vector.load %arg1[%c0, %c0_0] : memref<16x8192xf32, #tpu.memory_space<vmem>>, vector<16x8192xf32>
    %c0_1 = arith.constant 0 : index
    %c0_2 = arith.constant 0 : index
    %1 = vector.load %arg2[%c0_1, %c0_2] : memref<16x8192xf32, #tpu.memory_space<vmem>>, vector<16x8192xf32>
    tpu.vector_store %arg2[%c0_1, %c0_2], %0 {strides = array<i32>} : memref<16x8192xf32, #tpu.memory_space<vmem>>, vector<16x8192xf32>,
    return
  }
  func.func @transform_0(%arg0: i32) -> (i32, i32) {
    %c0_i32 = arith.constant 0 : i32
    %c0_i32_0 = arith.constant 0 : i32
    return %arg0, %c0_i32 : i32, i32
  }
  func.func @transform_1(%arg0: i32) -> (i32, i32) {
    %c0_i32 = arith.constant 0 : i32
    %c0_i32_0 = arith.constant 0 : i32
    return %arg0, %c0_i32 : i32, i32
  }
}

</mosaic_0001>

<bundles_post_ra>
// kernel: fn.1
= control target key start
LH: loop header
LB: loop body
LE: loop exit
PB: predicated region body
PF: predicated region fallthrough
CT: control target
= control target key end

     0   :  { %s1046_s0 = inlined_call_operand.vmem [shape: f32[16,8192], index: 0, kind: input, shape index: {}]   ;;  %s1047_s1 = inlined_call_operand.vmem [shape: f32[16,8192], index: 1, kind: output, shape index: {}]  }
   0x1   :  { %v8_v0 = vld [vmem:[%s1046_s0] sm:$0xff]  ;;  %v9_v1 = vld [vmem:[%s1046_s0 + $0x8] sm:$0xff]  ;;  %v10_v2 = vld [vmem:[%s1046_s0 + $0x10] sm:$0xff] }
   0x2   :  { %136 = vst [vmem:[%s1047_s1] sm:$0xff] %v8_v0  ;;  %137 = vst [vmem:[%s1047_s1 + $0x8] sm:$0xff] %v9_v1  ;;  %v11_v3 = vld [vmem:[%s1046_s0 + $0x18] sm:$0xff]  ;;  %v12_v4 = vld [vmem:[%s1046_s0 + $0x20] sm:$0xff] }
   0x3   :  { %138 = vst [vmem:[%s1047_s1 + $0x10] sm:$0xff] %v10_v2  ;;  %v13_v5 = vld [vmem:[%s1046_s0 + $0x28] sm:$0xff]  ;;  %139 = vst [vmem:[%s1047_s1 + $0x18] sm:$0xff] %v11_v3  ;;  %v14_v6 = vld [vmem:[%s1046_s0 + $0x30] sm:$0xff] }
   0x4   :  { %140 = vst [vmem:[%s1047_s1 + $0x20] sm:$0xff] %v12_v4  ;;  %141 = vst [vmem:[%s1047_s1 + $0x28] sm:$0xff] %v13_v5  ;;  %v15_v7 = vld [vmem:[%s1046_s0 + $0x38] sm:$0xff]  ;;  %v16_v8 = vld [vmem:[%s1046_s0 + $0x40] sm:$0xff] }
   0x5   :  { %142 = vst [vmem:[%s1047_s1 + $0x30] sm:$0xff] %v14_v6  ;;  %143 = vst [vmem:[%s1047_s1 + $0x38] sm:$0xff] %v15_v7  ;;  %v17_v9 = vld [vmem:[%s1046_s0 + $0x48] sm:$0xff]  ;;  %v18_v10 = vld [vmem:[%s1046_s0 + $0x50] sm:$0xff] }
   0x6   :  { %144 = vst [vmem:[%s1047_s1 + $0x40] sm:$0xff] %v16_v8  ;;  %v19_v11 = vld [vmem:[%s1046_s0 + $0x58] sm:$0xff]  ;;  %145 = vst [vmem:[%s1047_s1 + $0x48] sm:$0xff] %v17_v9  ;;  %v20_v12 = vld [vmem:[%s1046_s0 + $0x60] sm:$0xff] }
   0x7   :  { %146 = vst [vmem:[%s1047_s1 + $0x50] sm:$0xff] %v18_v10  ;;  %147 = vst [vmem:[%s1047_s1 + $0x58] sm:$0xff] %v19_v11  ;;  %v21_v13 = vld [vmem:[%s1046_s0 + $0x68] sm:$0xff]  ;;  %v22_v14 = vld [vmem:[%s1046_s0 + $0x70] sm:$0xff] }
   0x8   :  { %148 = vst [vmem:[%s1047_s1 + $0x60] sm:$0xff] %v20_v12  ;;  %149 = vst [vmem:[%s1047_s1 + $0x68] sm:$0xff] %v21_v13  ;;  %v23_v15 = vld [vmem:[%s1046_s0 + $0x78] sm:$0xff]  ;;  %v24_v16 = vld [vmem:[%s1046_s0 + $0x80] sm:$0xff] }
   0x9   :  { %150 = vst [vmem:[%s1047_s1 + $0x70] sm:$0xff] %v22_v14  ;;  %v25_v17 = vld [vmem:[%s1046_s0 + $0x88] sm:$0xff]  ;;  %151 = vst [vmem:[%s1047_s1 + $0x78] sm:$0xff] %v23_v15  ;;  %v26_v18 = vld [vmem:[%s1046_s0 + $0x90] sm:$0xff] }
   0xa   :  { %152 = vst [vmem:[%s1047_s1 + $0x80] sm:$0xff] %v24_v16  ;;  %153 = vst [vmem:[%s1047_s1 + $0x88] sm:$0xff] %v25_v17  ;;  %v27_v19 = vld [vmem:[%s1046_s0 + $0x98] sm:$0xff]  ;;  %v28_v20 = vld [vmem:[%s1046_s0 + $0xa0] sm:$0xff] }
   0xb   :  { %154 = vst [vmem:[%s1047_s1 + $0x90] sm:$0xff] %v26_v18  ;;  %155 = vst [vmem:[%s1047_s1 + $0x98] sm:$0xff] %v27_v19  ;;  %v29_v21 = vld [vmem:[%s1046_s0 + $0xa8] sm:$0xff]  ;;  %v30_v22 = vld [vmem:[%s1046_s0 + $0xb0] sm:$0xff] }
   0xc   :  { %156 = vst [vmem:[%s1047_s1 + $0xa0] sm:$0xff] %v28_v20  ;;  %v31_v23 = vld [vmem:[%s1046_s0 + $0xb8] sm:$0xff]  ;;  %157 = vst [vmem:[%s1047_s1 + $0xa8] sm:$0xff] %v29_v21  ;;  %v32_v24 = vld [vmem:[%s1046_s0 + $0xc0] sm:$0xff] }
   0xd   :  { %158 = vst [vmem:[%s1047_s1 + $0xb0] sm:$0xff] %v30_v22  ;;  %159 = vst [vmem:[%s1047_s1 + $0xb8] sm:$0xff] %v31_v23  ;;  %v33_v25 = vld [vmem:[%s1046_s0 + $0xc8] sm:$0xff]  ;;  %v34_v26 = vld [vmem:[%s1046_s0 + $0xd0] sm:$0xff] }
   0xe   :  { %160 = vst [vmem:[%s1047_s1 + $0xc0] sm:$0xff] %v32_v24  ;;  %161 = vst [vmem:[%s1047_s1 + $0xc8] sm:$0xff] %v33_v25  ;;  %v35_v27 = vld [vmem:[%s1046_s0 + $0xd8] sm:$0xff]  ;;  %v36_v28 = vld [vmem:[%s1046_s0 + $0xe0] sm:$0xff] }
   0xf   :  { %162 = vst [vmem:[%s1047_s1 + $0xd0] sm:$0xff] %v34_v26  ;;  %v37_v29 = vld [vmem:[%s1046_s0 + $0xe8] sm:$0xff]  ;;  %163 = vst [vmem:[%s1047_s1 + $0xd8] sm:$0xff] %v35_v27  ;;  %v38_v30 = vld [vmem:[%s1046_s0 + $0xf0] sm:$0xff] }
  0x10   :  { %164 = vst [vmem:[%s1047_s1 + $0xe0] sm:$0xff] %v36_v28  ;;  %165 = vst [vmem:[%s1047_s1 + $0xe8] sm:$0xff] %v37_v29  ;;  %v39_v31 = vld [vmem:[%s1046_s0 + $0xf8] sm:$0xff]  ;;  %v40_v32 = vld [vmem:[%s1046_s0 + $0x100] sm:$0xff] }
  0x11   :  { %166 = vst [vmem:[%s1047_s1 + $0xf0] sm:$0xff] %v38_v30  ;;  %167 = vst [vmem:[%s1047_s1 + $0xf8] sm:$0xff] %v39_v31  ;;  %v41_v33 = vld [vmem:[%s1046_s0 + $0x108] sm:$0xff]  ;;  %v42_v34 = vld [vmem:[%s1046_s0 + $0x110] sm:$0xff] }
  0x12   :  { %168 = vst [vmem:[%s1047_s1 + $0x100] sm:$0xff] %v40_v32  ;;  %v43_v35 = vld [vmem:[%s1046_s0 + $0x118] sm:$0xff]  ;;  %169 = vst [vmem:[%s1047_s1 + $0x108] sm:$0xff] %v41_v33  ;;  %v44_v36 = vld [vmem:[%s1046_s0 + $0x120] sm:$0xff] }
  0x13   :  { %170 = vst [vmem:[%s1047_s1 + $0x110] sm:$0xff] %v42_v34  ;;  %171 = vst [vmem:[%s1047_s1 + $0x118] sm:$0xff] %v43_v35  ;;  %v45_v37 = vld [vmem:[%s1046_s0 + $0x128] sm:$0xff]  ;;  %v46_v38 = vld [vmem:[%s1046_s0 + $0x130] sm:$0xff] }
  0x14   :  { %172 = vst [vmem:[%s1047_s1 + $0x120] sm:$0xff] %v44_v36  ;;  %173 = vst [vmem:[%s1047_s1 + $0x128] sm:$0xff] %v45_v37  ;;  %v47_v39 = vld [vmem:[%s1046_s0 + $0x138] sm:$0xff]  ;;  %v48_v40 = vld [vmem:[%s1046_s0 + $0x140] sm:$0xff] }
  0x15   :  { %174 = vst [vmem:[%s1047_s1 + $0x130] sm:$0xff] %v46_v38  ;;  %v49_v41 = vld [vmem:[%s1046_s0 + $0x148] sm:$0xff]  ;;  %175 = vst [vmem:[%s1047_s1 + $0x138] sm:$0xff] %v47_v39  ;;  %v50_v42 = vld [vmem:[%s1046_s0 + $0x150] sm:$0xff] }
  0x16   :  { %176 = vst [vmem:[%s1047_s1 + $0x140] sm:$0xff] %v48_v40  ;;  %177 = vst [vmem:[%s1047_s1 + $0x148] sm:$0xff] %v49_v41  ;;  %v51_v43 = vld [vmem:[%s1046_s0 + $0x158] sm:$0xff]  ;;  %v52_v44 = vld [vmem:[%s1046_s0 + $0x160] sm:$0xff] }
  0x17   :  { %178 = vst [vmem:[%s1047_s1 + $0x150] sm:$0xff] %v50_v42  ;;  %179 = vst [vmem:[%s1047_s1 + $0x158] sm:$0xff] %v51_v43  ;;  %v53_v45 = vld [vmem:[%s1046_s0 + $0x168] sm:$0xff]  ;;  %v54_v46 = vld [vmem:[%s1046_s0 + $0x170] sm:$0xff] }
  0x18   :  { %180 = vst [vmem:[%s1047_s1 + $0x160] sm:$0xff] %v52_v44  ;;  %v55_v47 = vld [vmem:[%s1046_s0 + $0x178] sm:$0xff]  ;;  %181 = vst [vmem:[%s1047_s1 + $0x168] sm:$0xff] %v53_v45  ;;  %v56_v48 = vld [vmem:[%s1046_s0 + $0x180] sm:$0xff] }
  0x19   :  { %182 = vst [vmem:[%s1047_s1 + $0x170] sm:$0xff] %v54_v46  ;;  %183 = vst [vmem:[%s1047_s1 + $0x178] sm:$0xff] %v55_v47  ;;  %v57_v49 = vld [vmem:[%s1046_s0 + $0x188] sm:$0xff]  ;;  %v58_v50 = vld [vmem:[%s1046_s0 + $0x190] sm:$0xff] }
  0x1a   :  { %184 = vst [vmem:[%s1047_s1 + $0x180] sm:$0xff] %v56_v48  ;;  %185 = vst [vmem:[%s1047_s1 + $0x188] sm:$0xff] %v57_v49  ;;  %v59_v51 = vld [vmem:[%s1046_s0 + $0x198] sm:$0xff]  ;;  %v60_v52 = vld [vmem:[%s1046_s0 + $0x1a0] sm:$0xff] }
  0x1b   :  { %186 = vst [vmem:[%s1047_s1 + $0x190] sm:$0xff] %v58_v50  ;;  %v61_v53 = vld [vmem:[%s1046_s0 + $0x1a8] sm:$0xff]  ;;  %187 = vst [vmem:[%s1047_s1 + $0x198] sm:$0xff] %v59_v51  ;;  %v62_v54 = vld [vmem:[%s1046_s0 + $0x1b0] sm:$0xff] }
  0x1c   :  { %188 = vst [vmem:[%s1047_s1 + $0x1a0] sm:$0xff] %v60_v52  ;;  %189 = vst [vmem:[%s1047_s1 + $0x1a8] sm:$0xff] %v61_v53  ;;  %v63_v55 = vld [vmem:[%s1046_s0 + $0x1b8] sm:$0xff]  ;;  %v64_v56 = vld [vmem:[%s1046_s0 + $0x1c0] sm:$0xff] }
  0x1d   :  { %190 = vst [vmem:[%s1047_s1 + $0x1b0] sm:$0xff] %v62_v54  ;;  %191 = vst [vmem:[%s1047_s1 + $0x1b8] sm:$0xff] %v63_v55  ;;  %v65_v57 = vld [vmem:[%s1046_s0 + $0x1c8] sm:$0xff]  ;;  %v66_v58 = vld [vmem:[%s1046_s0 + $0x1d0] sm:$0xff] }
  0x1e   :  { %192 = vst [vmem:[%s1047_s1 + $0x1c0] sm:$0xff] %v64_v56  ;;  %v67_v59 = vld [vmem:[%s1046_s0 + $0x1d8] sm:$0xff]  ;;  %193 = vst [vmem:[%s1047_s1 + $0x1c8] sm:$0xff] %v65_v57  ;;  %v68_v60 = vld [vmem:[%s1046_s0 + $0x1e0] sm:$0xff] }
  0x1f   :  { %194 = vst [vmem:[%s1047_s1 + $0x1d0] sm:$0xff] %v66_v58  ;;  %195 = vst [vmem:[%s1047_s1 + $0x1d8] sm:$0xff] %v67_v59  ;;  %v69_v61 = vld [vmem:[%s1046_s0 + $0x1e8] sm:$0xff]  ;;  %v70_v62 = vld [vmem:[%s1046_s0 + $0x1f0] sm:$0xff] }
  0x20   :  { %196 = vst [vmem:[%s1047_s1 + $0x1e0] sm:$0xff] %v68_v60  ;;  %197 = vst [vmem:[%s1047_s1 + $0x1e8] sm:$0xff] %v69_v61  ;;  %v71_v63 = vld [vmem:[%s1046_s0 + $0x1f8] sm:$0xff]  ;;  %v72_v0 = vld [vmem:[%s1046_s0 + $0x200] sm:$0xff] }
  0x21   :  { %198 = vst [vmem:[%s1047_s1 + $0x1f0] sm:$0xff] %v70_v62  ;;  %v73_v1 = vld [vmem:[%s1046_s0 + $0x208] sm:$0xff]  ;;  %199 = vst [vmem:[%s1047_s1 + $0x1f8] sm:$0xff] %v71_v63  ;;  %v74_v2 = vld [vmem:[%s1046_s0 + $0x210] sm:$0xff] }
  0x22   :  { %200 = vst [vmem:[%s1047_s1 + $0x200] sm:$0xff] %v72_v0  ;;  %201 = vst [vmem:[%s1047_s1 + $0x208] sm:$0xff] %v73_v1  ;;  %v75_v3 = vld [vmem:[%s1046_s0 + $0x218] sm:$0xff]  ;;  %v76_v4 = vld [vmem:[%s1046_s0 + $0x220] sm:$0xff] }
  0x23   :  { %202 = vst [vmem:[%s1047_s1 + $0x210] sm:$0xff] %v74_v2  ;;  %203 = vst [vmem:[%s1047_s1 + $0x218] sm:$0xff] %v75_v3  ;;  %v77_v5 = vld [vmem:[%s1046_s0 + $0x228] sm:$0xff]  ;;  %v78_v6 = vld [vmem:[%s1046_s0 + $0x230] sm:$0xff] }
  0x24   :  { %204 = vst [vmem:[%s1047_s1 + $0x220] sm:$0xff] %v76_v4  ;;  %v79_v7 = vld [vmem:[%s1046_s0 + $0x238] sm:$0xff]  ;;  %205 = vst [vmem:[%s1047_s1 + $0x228] sm:$0xff] %v77_v5  ;;  %v80_v8 = vld [vmem:[%s1046_s0 + $0x240] sm:$0xff] }
  0x25   :  { %206 = vst [vmem:[%s1047_s1 + $0x230] sm:$0xff] %v78_v6  ;;  %207 = vst [vmem:[%s1047_s1 + $0x238] sm:$0xff] %v79_v7  ;;  %v81_v9 = vld [vmem:[%s1046_s0 + $0x248] sm:$0xff]  ;;  %v82_v10 = vld [vmem:[%s1046_s0 + $0x250] sm:$0xff] }
  0x26   :  { %208 = vst [vmem:[%s1047_s1 + $0x240] sm:$0xff] %v80_v8  ;;  %209 = vst [vmem:[%s1047_s1 + $0x248] sm:$0xff] %v81_v9  ;;  %v83_v11 = vld [vmem:[%s1046_s0 + $0x258] sm:$0xff]  ;;  %v84_v12 = vld [vmem:[%s1046_s0 + $0x260] sm:$0xff] }
  0x27   :  { %210 = vst [vmem:[%s1047_s1 + $0x250] sm:$0xff] %v82_v10  ;;  %v85_v13 = vld [vmem:[%s1046_s0 + $0x268] sm:$0xff]  ;;  %211 = vst [vmem:[%s1047_s1 + $0x258] sm:$0xff] %v83_v11  ;;  %v86_v14 = vld [vmem:[%s1046_s0 + $0x270] sm:$0xff] }
  0x28   :  { %212 = vst [vmem:[%s1047_s1 + $0x260] sm:$0xff] %v84_v12  ;;  %213 = vst [vmem:[%s1047_s1 + $0x268] sm:$0xff] %v85_v13  ;;  %v87_v15 = vld [vmem:[%s1046_s0 + $0x278] sm:$0xff]  ;;  %v88_v16 = vld [vmem:[%s1046_s0 + $0x280] sm:$0xff] }
  0x29   :  { %214 = vst [vmem:[%s1047_s1 + $0x270] sm:$0xff] %v86_v14  ;;  %215 = vst [vmem:[%s1047_s1 + $0x278] sm:$0xff] %v87_v15  ;;  %v89_v17 = vld [vmem:[%s1046_s0 + $0x288] sm:$0xff]  ;;  %v90_v18 = vld [vmem:[%s1046_s0 + $0x290] sm:$0xff] }
  0x2a   :  { %216 = vst [vmem:[%s1047_s1 + $0x280] sm:$0xff] %v88_v16  ;;  %v91_v19 = vld [vmem:[%s1046_s0 + $0x298] sm:$0xff]  ;;  %217 = vst [vmem:[%s1047_s1 + $0x288] sm:$0xff] %v89_v17  ;;  %v92_v20 = vld [vmem:[%s1046_s0 + $0x2a0] sm:$0xff] }
  0x2b   :  { %218 = vst [vmem:[%s1047_s1 + $0x290] sm:$0xff] %v90_v18  ;;  %219 = vst [vmem:[%s1047_s1 + $0x298] sm:$0xff] %v91_v19  ;;  %v93_v21 = vld [vmem:[%s1046_s0 + $0x2a8] sm:$0xff]  ;;  %v94_v22 = vld [vmem:[%s1046_s0 + $0x2b0] sm:$0xff] }
  0x2c   :  { %220 = vst [vmem:[%s1047_s1 + $0x2a0] sm:$0xff] %v92_v20  ;;  %221 = vst [vmem:[%s1047_s1 + $0x2a8] sm:$0xff] %v93_v21  ;;  %v95_v23 = vld [vmem:[%s1046_s0 + $0x2b8] sm:$0xff]  ;;  %v96_v24 = vld [vmem:[%s1046_s0 + $0x2c0] sm:$0xff] }
  0x2d   :  { %222 = vst [vmem:[%s1047_s1 + $0x2b0] sm:$0xff] %v94_v22  ;;  %v97_v25 = vld [vmem:[%s1046_s0 + $0x2c8] sm:$0xff]  ;;  %223 = vst [vmem:[%s1047_s1 + $0x2b8] sm:$0xff] %v95_v23  ;;  %v98_v26 = vld [vmem:[%s1046_s0 + $0x2d0] sm:$0xff] }
  0x2e   :  { %224 = vst [vmem:[%s1047_s1 + $0x2c0] sm:$0xff] %v96_v24  ;;  %225 = vst [vmem:[%s1047_s1 + $0x2c8] sm:$0xff] %v97_v25  ;;  %v99_v27 = vld [vmem:[%s1046_s0 + $0x2d8] sm:$0xff]  ;;  %v100_v28 = vld [vmem:[%s1046_s0 + $0x2e0] sm:$0xff] }
  0x2f   :  { %226 = vst [vmem:[%s1047_s1 + $0x2d0] sm:$0xff] %v98_v26  ;;  %227 = vst [vmem:[%s1047_s1 + $0x2d8] sm:$0xff] %v99_v27  ;;  %v101_v29 = vld [vmem:[%s1046_s0 + $0x2e8] sm:$0xff]  ;;  %v102_v30 = vld [vmem:[%s1046_s0 + $0x2f0] sm:$0xff] }
  0x30   :  { %228 = vst [vmem:[%s1047_s1 + $0x2e0] sm:$0xff] %v100_v28  ;;  %v103_v31 = vld [vmem:[%s1046_s0 + $0x2f8] sm:$0xff]  ;;  %229 = vst [vmem:[%s1047_s1 + $0x2e8] sm:$0xff] %v101_v29  ;;  %v104_v32 = vld [vmem:[%s1046_s0 + $0x300] sm:$0xff] }
  0x31   :  { %230 = vst [vmem:[%s1047_s1 + $0x2f0] sm:$0xff] %v102_v30  ;;  %231 = vst [vmem:[%s1047_s1 + $0x2f8] sm:$0xff] %v103_v31  ;;  %v105_v33 = vld [vmem:[%s1046_s0 + $0x308] sm:$0xff]  ;;  %v106_v34 = vld [vmem:[%s1046_s0 + $0x310] sm:$0xff] }
  0x32   :  { %232 = vst [vmem:[%s1047_s1 + $0x300] sm:$0xff] %v104_v32  ;;  %233 = vst [vmem:[%s1047_s1 + $0x308] sm:$0xff] %v105_v33  ;;  %v107_v35 = vld [vmem:[%s1046_s0 + $0x318] sm:$0xff]  ;;  %v108_v36 = vld [vmem:[%s1046_s0 + $0x320] sm:$0xff] }
  0x33   :  { %234 = vst [vmem:[%s1047_s1 + $0x310] sm:$0xff] %v106_v34  ;;  %v109_v37 = vld [vmem:[%s1046_s0 + $0x328] sm:$0xff]  ;;  %235 = vst [vmem:[%s1047_s1 + $0x318] sm:$0xff] %v107_v35  ;;  %v110_v38 = vld [vmem:[%s1046_s0 + $0x330] sm:$0xff] }
  0x34   :  { %236 = vst [vmem:[%s1047_s1 + $0x320] sm:$0xff] %v108_v36  ;;  %237 = vst [vmem:[%s1047_s1 + $0x328] sm:$0xff] %v109_v37  ;;  %v111_v39 = vld [vmem:[%s1046_s0 + $0x338] sm:$0xff]  ;;  %v112_v40 = vld [vmem:[%s1046_s0 + $0x340] sm:$0xff] }
  0x35   :  { %238 = vst [vmem:[%s1047_s1 + $0x330] sm:$0xff] %v110_v38  ;;  %239 = vst [vmem:[%s1047_s1 + $0x338] sm:$0xff] %v111_v39  ;;  %v113_v41 = vld [vmem:[%s1046_s0 + $0x348] sm:$0xff]  ;;  %v114_v42 = vld [vmem:[%s1046_s0 + $0x350] sm:$0xff] }
  0x36   :  { %240 = vst [vmem:[%s1047_s1 + $0x340] sm:$0xff] %v112_v40  ;;  %v115_v43 = vld [vmem:[%s1046_s0 + $0x358] sm:$0xff]  ;;  %241 = vst [vmem:[%s1047_s1 + $0x348] sm:$0xff] %v113_v41  ;;  %v116_v44 = vld [vmem:[%s1046_s0 + $0x360] sm:$0xff] }
  0x37   :  { %242 = vst [vmem:[%s1047_s1 + $0x350] sm:$0xff] %v114_v42  ;;  %243 = vst [vmem:[%s1047_s1 + $0x358] sm:$0xff] %v115_v43  ;;  %v117_v45 = vld [vmem:[%s1046_s0 + $0x368] sm:$0xff]  ;;  %v118_v46 = vld [vmem:[%s1046_s0 + $0x370] sm:$0xff] }
  0x38   :  { %244 = vst [vmem:[%s1047_s1 + $0x360] sm:$0xff] %v116_v44  ;;  %245 = vst [vmem:[%s1047_s1 + $0x368] sm:$0xff] %v117_v45  ;;  %v119_v47 = vld [vmem:[%s1046_s0 + $0x378] sm:$0xff]  ;;  %v120_v48 = vld [vmem:[%s1046_s0 + $0x380] sm:$0xff] }
  0x39   :  { %246 = vst [vmem:[%s1047_s1 + $0x370] sm:$0xff] %v118_v46  ;;  %v121_v49 = vld [vmem:[%s1046_s0 + $0x388] sm:$0xff]  ;;  %247 = vst [vmem:[%s1047_s1 + $0x378] sm:$0xff] %v119_v47  ;;  %v122_v50 = vld [vmem:[%s1046_s0 + $0x390] sm:$0xff] }
  0x3a   :  { %248 = vst [vmem:[%s1047_s1 + $0x380] sm:$0xff] %v120_v48  ;;  %249 = vst [vmem:[%s1047_s1 + $0x388] sm:$0xff] %v121_v49  ;;  %v123_v51 = vld [vmem:[%s1046_s0 + $0x398] sm:$0xff]  ;;  %v124_v52 = vld [vmem:[%s1046_s0 + $0x3a0] sm:$0xff] }
  0x3b   :  { %250 = vst [vmem:[%s1047_s1 + $0x390] sm:$0xff] %v122_v50  ;;  %251 = vst [vmem:[%s1047_s1 + $0x398] sm:$0xff] %v123_v51  ;;  %v125_v53 = vld [vmem:[%s1046_s0 + $0x3a8] sm:$0xff]  ;;  %v126_v54 = vld [vmem:[%s1046_s0 + $0x3b0] sm:$0xff] }
  0x3c   :  { %252 = vst [vmem:[%s1047_s1 + $0x3a0] sm:$0xff] %v124_v52  ;;  %v127_v55 = vld [vmem:[%s1046_s0 + $0x3b8] sm:$0xff]  ;;  %253 = vst [vmem:[%s1047_s1 + $0x3a8] sm:$0xff] %v125_v53  ;;  %v128_v56 = vld [vmem:[%s1046_s0 + $0x3c0] sm:$0xff] }
  0x3d   :  { %254 = vst [vmem:[%s1047_s1 + $0x3b0] sm:$0xff] %v126_v54  ;;  %255 = vst [vmem:[%s1047_s1 + $0x3b8] sm:$0xff] %v127_v55  ;;  %v129_v57 = vld [vmem:[%s1046_s0 + $0x3c8] sm:$0xff]  ;;  %v130_v58 = vld [vmem:[%s1046_s0 + $0x3d0] sm:$0xff] }
  0x3e   :  { %256 = vst [vmem:[%s1047_s1 + $0x3c0] sm:$0xff] %v128_v56  ;;  %257 = vst [vmem:[%s1047_s1 + $0x3c8] sm:$0xff] %v129_v57  ;;  %v131_v59 = vld [vmem:[%s1046_s0 + $0x3d8] sm:$0xff]  ;;  %v132_v60 = vld [vmem:[%s1046_s0 + $0x3e0] sm:$0xff] }
  0x3f   :  { %258 = vst [vmem:[%s1047_s1 + $0x3d0] sm:$0xff] %v130_v58  ;;  %v133_v61 = vld [vmem:[%s1046_s0 + $0x3e8] sm:$0xff]  ;;  %259 = vst [vmem:[%s1047_s1 + $0x3d8] sm:$0xff] %v131_v59  ;;  %v134_v62 = vld [vmem:[%s1046_s0 + $0x3f0] sm:$0xff] }
  0x40   :  { %260 = vst [vmem:[%s1047_s1 + $0x3e0] sm:$0xff] %v132_v60  ;;  %261 = vst [vmem:[%s1047_s1 + $0x3e8] sm:$0xff] %v133_v61  ;;  %v135_v63 = vld [vmem:[%s1046_s0 + $0x3f8] sm:$0xff] }
  0x41   :  { %262 = vst [vmem:[%s1047_s1 + $0x3f0] sm:$0xff] %v134_v62  ;;  %263 = vst [vmem:[%s1047_s1 + $0x3f8] sm:$0xff] %v135_v63 }

</bundles_post_ra>
